<compile_context>
chip_gen: v7x
topology: tpu7x:2x2x1
jax: 0.10.0
libtpu: 0.0.40
codegen_flags: <defaults>
</compile_context>

<pallas_src>
import jax
import jax.numpy as jnp
from jax.experimental import pallas as pl
from jax.experimental.pallas import tpu as pltpu


def _make_kernel(num_frame, tile_rows, width, hc, wc, do_norm):
    """Kernel body. Inputs: num_frame refs of shape (C, TILE_ROWS, W); output (TILE_ROWS, W)."""

    def kernel(*refs):
        frame_refs = refs[:num_frame]
        o_ref = refs[num_frame]
        jh = pl.program_id(1)

        # Valid-pixel mask: only rows < hc / cols < wc are covered by the regular
        # block proposals; also masks out padded rows of a ragged last tile.
        row = jax.lax.broadcasted_iota(jnp.int32, (tile_rows, width), 0) + jh * tile_rows
        col = jax.lax.broadcasted_iota(jnp.int32, (tile_rows, width), 1)
        valid = (row < hc) & (col < wc)

        def load_norm(ref):
            x = ref[...].astype(jnp.float32)                    # (C, TH, W)
            if do_norm:
                # F.normalize(x, dim=1, p=2): x / max(||x||_2, 1e-12) per pixel,
                # expressed as x * rsqrt(max(sum_sq, 1e-24)) (same clamp).
                ss = jnp.sum(x * x, axis=0, keepdims=True)
                x = x * jax.lax.rsqrt(jnp.maximum(ss, 1e-24))
            return x

        # Pairwise accumulation: only two frames live at a time.
        prev = load_norm(frame_refs[0])
        acc = jnp.zeros((tile_rows, width), jnp.float32)
        for t in range(1, num_frame):
            cur = load_norm(frame_refs[t])
            acc = acc + jnp.sum(jnp.abs(cur - prev), axis=0)    # sum over channels
            prev = cur
        acc = jnp.where(valid, acc, 0.0)

        # Output block is resident across the (arbitrary) spatial axis: init once,
        # then accumulate; written back to HBM once per sample.
        @pl.when(jh == 0)
        def _():
            o_ref[...] = jnp.zeros_like(o_ref)

        o_ref[...] += acc

    return kernel


def _choose_tile_rows(h, w, c, num_frame, itemsize, target_bytes=8 << 20):
    """Largest legal tile height (multiple of 8, or full H) with ~target_bytes input per tile."""
    per_row = max(1, num_frame * c * w * itemsize)
    th = (target_bytes // per_row) // 8 * 8
    if h <= 8 or th >= h:
        return h
    return max(8, min(th, (h // 8) * 8))


def temporal_loss_no_classwise(feats, masks=None, *, block_size, norm=True,
                               loss_weight=1.0, tile_rows=None):
    """Pallas implementation of TemporalLoss_NoClassWise.forward for the
    regular-grid proposal path (regular=True equivalent; masks are unused there).

    feats: list of num_frame arrays, each (N, C, H, W), f32 or bf16.
    """
    del masks  # unused in the regular-proposal path
    num_frame = len(feats)
    n, c, h, w = feats[0].shape
    b = block_size
    nbh, nbw = h // b, w // b
    assert nbh > 0 and nbw > 0
    hc, wc = nbh * b, nbw * b                   # region covered by proposals

    itemsize = jnp.dtype(feats[0].dtype).itemsize
    th = _choose_tile_rows(h, w, c, num_frame, itemsize) if tile_rows is None else tile_rows
    assert th == h or th % 8 == 0, "tile_rows must be a multiple of 8 or equal to H"
    n_h_tiles = pl.cdiv(h, th)

    in_spec = pl.BlockSpec((None, c, th, w), lambda i, jh: (i, 0, jh, 0))
    out_spec = pl.BlockSpec((None, th, w), lambda i, jh: (i, 0, 0))

    # 2x (double-buffered) inputs + output block + slack, clamped to sane bounds.
    vmem_bytes = 2 * num_frame * c * th * w * itemsize + 2 * th * w * 4 + (2 << 20)
    vmem_bytes = int(min(max(vmem_bytes, 16 << 20), 64 << 20))

    per_sample = pl.pallas_call(
        _make_kernel(num_frame, th, w, hc, wc, norm),
        out_shape=jax.ShapeDtypeStruct((n, th, w), jnp.float32),
        grid=(n, n_h_tiles),
        in_specs=[in_spec] * num_frame,
        out_specs=out_spec,
        compiler_params=pltpu.CompilerParams(
            dimension_semantics=("parallel", "arbitrary"),
            vmem_limit_bytes=vmem_bytes,
        ),
    )(*feats)

    # Reassemble the PyTorch reduction:
    #   per proposal: loss_sample = (1/(F-1)) * sum_t mean_{c,b,b} |diff|
    #   loss = (sum over samples & proposals) / count, count = n * nbh * nbw
    total_abs = jnp.sum(per_sample)
    count = n * nbh * nbw
    loss = total_abs / ((num_frame - 1) * c * b * b) / count
    return loss * loss_weight


def _reference_loss(feats, block_size, loss_weight=1.0):
    """Pure-JAX mirror of the PyTorch loops (regular proposals, defaults)."""
    fn = len(feats)
    feats_n = [f / jnp.maximum(jnp.linalg.norm(f, axis=1, keepdims=True), 1e-12)
               for f in feats]
    n, c, h, w = feats[0].shape
    b = block_size
    loss = 0.0
    count = 0
    for i in range(n):
        for bi in range(h // b):
            for bj in range(w // b):
                ls = 0.0
                for t in range(fn - 1):
                    a = feats_n[t][i, :, bi * b:(bi + 1) * b, bj * b:(bj + 1) * b]
                    bb = feats_n[t + 1][i, :, bi * b:(bi + 1) * b, bj * b:(bj + 1) * b]
                    ls += jnp.mean(jnp.abs(a - bb))
                ls = ls / (fn - 1)
                loss += ls
                count += 1
    return loss / count * loss_weight


if __name__ == "__main__":
    key = jax.random.PRNGKey(0)
    num_frame, N, C, H, W = 3, 2, 4, 16, 16
    block_size = 4

    keys = jax.random.split(key, num_frame + 1)
    feats = [jax.random.normal(keys[t], (N, C, H, W), dtype=jnp.float32)
             for t in range(num_frame)]
    # masks only matter for the (untranslated) boundary-sampling path; built for
    # interface fidelity.
    masks = [jax.random.randint(keys[-1], (N, 1, H, W), 0, 3, dtype=jnp.int32)
             for _ in range(num_frame)]

    # tile_rows=8 forces 2 spatial tiles so the accumulation path is exercised.
    loss = temporal_loss_no_classwise(feats, masks, block_size=block_size,
                                      norm=True, loss_weight=1.0, tile_rows=8)
    loss = jax.block_until_ready(loss)

    ref = _reference_loss(feats, block_size)
    err = abs(float(loss) - float(ref))
    assert err < 1e-4 * max(1.0, abs(float(ref))), (float(loss), float(ref))

    print("KERNEL_OK")
</pallas_src>

<mosaic_0001>
module attributes {stable_mosaic.version = 11 : i64} {
  func.func @kernel(%arg0: i32, %arg1: i32, %arg2: memref<1x4x8x16xf32, #tpu.memory_space<vmem>>, %arg3: memref<1x4x8x16xf32, #tpu.memory_space<vmem>>, %arg4: memref<1x4x8x16xf32, #tpu.memory_space<vmem>>, %arg5: memref<1x8x16xf32, #tpu.memory_space<vmem>>) attributes {dimension_semantics = [#tpu.dimension_semantics<parallel>, #tpu.dimension_semantics<arbitrary>], iteration_bounds = array<i64: 2, 2>, scalar_prefetch = 0 : i64, scratch_operands = 0 : i64, tpu.core_type = #tpu.core_type<tc>, window_params = [{transform_indices = @transform_0, window_bounds = array<i64: 1, 4, 8, 16>}, {transform_indices = @transform_1, window_bounds = array<i64: 1, 4, 8, 16>}, {transform_indices = @transform_2, window_bounds = array<i64: 1, 4, 8, 16>}, {transform_indices = @transform_3, window_bounds = array<i64: 1, 8, 16>}]} {
    %0 = tpu.iota {dimensions = array<i32: 0>} : vector<8x16xi32>
    %c8_i32 = arith.constant 8 : i32
    %1 = arith.muli %arg1, %c8_i32 : i32
    %2 = vector.broadcast %1 : i32 to vector<8x16xi32>
    %3 = arith.addi %0, %2 : vector<8x16xi32>
    %4 = tpu.iota {dimensions = array<i32: 1>} : vector<8x16xi32>
    %c16_i32 = arith.constant 16 : i32
    %5 = vector.broadcast %c16_i32 : i32 to vector<8x16xi32>
    %6 = arith.cmpi slt, %3, %5 : vector<8x16xi32>
    %c16_i32_0 = arith.constant 16 : i32
    %7 = vector.broadcast %c16_i32_0 : i32 to vector<8x16xi32>
    %8 = arith.cmpi slt, %4, %7 : vector<8x16xi32>
    %9 = arith.andi %6, %8 : vector<8x16xi1>
    %c0 = arith.constant 0 : index
    %c0_1 = arith.constant 0 : index
    %c0_2 = arith.constant 0 : index
    %c0_3 = arith.constant 0 : index
    %10 = vector.load %arg2[%c0, %c0_1, %c0_2, %c0_3] : memref<1x4x8x16xf32, #tpu.memory_space<vmem>>, vector<1x4x8x16xf32>
    %11 = vector.shape_cast %10 : vector<1x4x8x16xf32> to vector<4x8x16xf32>
    %12 = arith.mulf %11, %11 : vector<4x8x16xf32>
    %cst = arith.constant dense<0.000000e+00> : vector<8x16xf32>
    %13 = vector.multi_reduction <add>, %12, %cst [0] : vector<4x8x16xf32> to vector<8x16xf32>
    %14 = vector.shape_cast %13 : vector<8x16xf32> to vector<1x8x16xf32>
    %cst_4 = arith.constant 1.000000e-24 : f32
    %15 = vector.broadcast %cst_4 : f32 to vector<1x8x16xf32>
    %16 = arith.maximumf %14, %15 : vector<1x8x16xf32>
    %17 = math.rsqrt %16 : vector<1x8x16xf32>
    %18 = vector.broadcast %17 : vector<1x8x16xf32> to vector<4x8x16xf32>
    %19 = arith.mulf %11, %18 : vector<4x8x16xf32>
    %cst_5 = arith.constant 0.000000e+00 : f32
    %20 = vector.broadcast %cst_5 : f32 to vector<8x16xf32>
    %c0_6 = arith.constant 0 : index
    %c0_7 = arith.constant 0 : index
    %c0_8 = arith.constant 0 : index
    %c0_9 = arith.constant 0 : index
    %21 = vector.load %arg3[%c0_6, %c0_7, %c0_8, %c0_9] : memref<1x4x8x16xf32, #tpu.memory_space<vmem>>, vector<1x4x8x16xf32>
    %22 = vector.shape_cast %21 : vector<1x4x8x16xf32> to vector<4x8x16xf32>
    %23 = arith.mulf %22, %22 : vector<4x8x16xf32>
    %cst_10 = arith.constant dense<0.000000e+00> : vector<8x16xf32>
    %24 = vector.multi_reduction <add>, %23, %cst_10 [0] : vector<4x8x16xf32> to vector<8x16xf32>
    %25 = vector.shape_cast %24 : vector<8x16xf32> to vector<1x8x16xf32>
    %cst_11 = arith.constant 1.000000e-24 : f32
    %26 = vector.broadcast %cst_11 : f32 to vector<1x8x16xf32>
    %27 = arith.maximumf %25, %26 : vector<1x8x16xf32>
    %28 = math.rsqrt %27 : vector<1x8x16xf32>
    %29 = vector.broadcast %28 : vector<1x8x16xf32> to vector<4x8x16xf32>
    %30 = arith.mulf %22, %29 : vector<4x8x16xf32>
    %31 = arith.subf %30, %19 : vector<4x8x16xf32>
    %32 = math.absf %31 : vector<4x8x16xf32>
    %cst_12 = arith.constant dense<0.000000e+00> : vector<8x16xf32>
    %33 = vector.multi_reduction <add>, %32, %cst_12 [0] : vector<4x8x16xf32> to vector<8x16xf32>
    %34 = arith.addf %20, %33 : vector<8x16xf32>
    %c0_13 = arith.constant 0 : index
    %c0_14 = arith.constant 0 : index
    %c0_15 = arith.constant 0 : index
    %c0_16 = arith.constant 0 : index
    %35 = vector.load %arg4[%c0_13, %c0_14, %c0_15, %c0_16] : memref<1x4x8x16xf32, #tpu.memory_space<vmem>>, vector<1x4x8x16xf32>
    %36 = vector.shape_cast %35 : vector<1x4x8x16xf32> to vector<4x8x16xf32>
    %37 = arith.mulf %36, %36 : vector<4x8x16xf32>
    %cst_17 = arith.constant dense<0.000000e+00> : vector<8x16xf32>
    %38 = vector.multi_reduction <add>, %37, %cst_17 [0] : vector<4x8x16xf32> to vector<8x16xf32>
    %39 = vector.shape_cast %38 : vector<8x16xf32> to vector<1x8x16xf32>
    %cst_18 = arith.constant 1.000000e-24 : f32
    %40 = vector.broadcast %cst_18 : f32 to vector<1x8x16xf32>
    %41 = arith.maximumf %39, %40 : vector<1x8x16xf32>
    %42 = math.rsqrt %41 : vector<1x8x16xf32>
    %43 = vector.broadcast %42 : vector<1x8x16xf32> to vector<4x8x16xf32>
    %44 = arith.mulf %36, %43 : vector<4x8x16xf32>
    %45 = arith.subf %44, %30 : vector<4x8x16xf32>
    %46 = math.absf %45 : vector<4x8x16xf32>
    %cst_19 = arith.constant dense<0.000000e+00> : vector<8x16xf32>
    %47 = vector.multi_reduction <add>, %46, %cst_19 [0] : vector<4x8x16xf32> to vector<8x16xf32>
    %48 = arith.addf %34, %47 : vector<8x16xf32>
    %cst_20 = arith.constant 0.000000e+00 : f32
    %49 = vector.broadcast %cst_20 : f32 to vector<8x16xf32>
    %50 = arith.select %9, %48, %49 : vector<8x16xi1>, vector<8x16xf32>
    %c0_i32 = arith.constant 0 : i32
    %51 = arith.cmpi eq, %arg1, %c0_i32 : i32
    %52 = arith.extui %51 : i1 to i32
    %c0_i32_21 = arith.constant 0 : i32
    %53 = arith.cmpi ne, %52, %c0_i32_21 : i32
    scf.if %53 {
      %cst_28 = arith.constant 0.000000e+00 : f32
      %60 = vector.broadcast %cst_28 : f32 to vector<8x16xf32>
      %c0_29 = arith.constant 0 : index
      %c0_30 = arith.constant 0 : index
      %c0_31 = arith.constant 0 : index
      %61 = vector.load %arg5[%c0_29, %c0_30, %c0_31] : memref<1x8x16xf32, #tpu.memory_space<vmem>>, vector<1x8x16xf32>
      %62 = vector.shape_cast %61 : vector<1x8x16xf32> to vector<8x16xf32>
      %63 = vector.shape_cast %60 : vector<8x16xf32> to vector<1x8x16xf32>
      tpu.vector_store %arg5[%c0_29, %c0_30, %c0_31], %63 {strides = array<i32>} : memref<1x8x16xf32, #tpu.memory_space<vmem>>, vector<1x8x16xf32>,
    } else {
    }
    %c0_22 = arith.constant 0 : index
    %c0_23 = arith.constant 0 : index
    %c0_24 = arith.constant 0 : index
    %54 = vector.load %arg5[%c0_22, %c0_23, %c0_24] : memref<1x8x16xf32, #tpu.memory_space<vmem>>, vector<1x8x16xf32>
    %55 = vector.shape_cast %54 : vector<1x8x16xf32> to vector<8x16xf32>
    %56 = arith.addf %55, %50 : vector<8x16xf32>
    %c0_25 = arith.constant 0 : index
    %c0_26 = arith.constant 0 : index
    %c0_27 = arith.constant 0 : index
    %57 = vector.load %arg5[%c0_25, %c0_26, %c0_27] : memref<1x8x16xf32, #tpu.memory_space<vmem>>, vector<1x8x16xf32>
    %58 = vector.shape_cast %57 : vector<1x8x16xf32> to vector<8x16xf32>
    %59 = vector.shape_cast %56 : vector<8x16xf32> to vector<1x8x16xf32>
    tpu.vector_store %arg5[%c0_25, %c0_26, %c0_27], %59 {strides = array<i32>} : memref<1x8x16xf32, #tpu.memory_space<vmem>>, vector<1x8x16xf32>,
    return
  }
  func.func @transform_0(%arg0: i32, %arg1: i32) -> (i32, i32, i32, i32) {
    %c0_i32 = arith.constant 0 : i32
    %c0_i32_0 = arith.constant 0 : i32
    %c0_i32_1 = arith.constant 0 : i32
    return %arg0, %c0_i32, %arg1, %c0_i32_0 : i32, i32, i32, i32
  }
  func.func @transform_1(%arg0: i32, %arg1: i32) -> (i32, i32, i32, i32) {
    %c0_i32 = arith.constant 0 : i32
    %c0_i32_0 = arith.constant 0 : i32
    %c0_i32_1 = arith.constant 0 : i32
    return %arg0, %c0_i32, %arg1, %c0_i32_0 : i32, i32, i32, i32
  }
  func.func @transform_2(%arg0: i32, %arg1: i32) -> (i32, i32, i32, i32) {
    %c0_i32 = arith.constant 0 : i32
    %c0_i32_0 = arith.constant 0 : i32
    %c0_i32_1 = arith.constant 0 : i32
    return %arg0, %c0_i32, %arg1, %c0_i32_0 : i32, i32, i32, i32
  }
  func.func @transform_3(%arg0: i32, %arg1: i32) -> (i32, i32, i32) {
    %c0_i32 = arith.constant 0 : i32
    %c0_i32_0 = arith.constant 0 : i32
    %c0_i32_1 = arith.constant 0 : i32
    return %arg0, %c0_i32, %c0_i32_0 : i32, i32, i32
  }
}

</mosaic_0001>

<bundles_post_ra>
// kernel: tpu_custom_call.1
= control target key start
LH: loop header
LB: loop body
LE: loop exit
PB: predicated region body
PF: predicated region fallthrough
CT: control target
= control target key end

     0   :  { %s1289_s0 = inlined_call_operand.hbm [shape: f32[2,4,16,16], index: 0, kind: input, shape index: {}]   ;;  %s1290_s1 = inlined_call_operand.hbm [shape: f32[2,4,16,16], index: 1, kind: input, shape index: {}]   ;;  %s1291_s2 = inlined_call_operand.hbm [shape: f32[2,4,16,16], index: 2, kind: input, shape index: {}]   ;;  %s1292_s3 = inlined_call_operand.hbm [shape: f32[2,8,16], index: 3, kind: output, shape index: {}]  }
   0x1   :  { %1308 = sst [smem:[#allocation20_spill]] %s1289_s0 }
   0x2   :  { %1309 = sst [smem:[#allocation21_spill]] %s1290_s1 }
   0x3   :  { %8 = vsyncpa [#allocation3], 0 }
   0x4   :  { %10 = vsyncpa [#allocation3 + $0x1], 0 }
   0x5   :  { %11 = vsyncpa [#allocation6], 0 }
   0x6   :  { %13 = vsyncpa [#allocation6 + $0x1], 0 }
   0x7   :  { %14 = vsyncpa [#allocation4], 0 }
   0x8   :  { %16 = vsyncpa [#allocation4 + $0x1], 0  ;;  %s938_s12 = smov 0   ;;  %s940_s13 = smov 0  }
   0x9   :  { %s942_s14 = smov 0   ;;  %s944_s15 = smov 0  }
   0xa   :  { %s946_s16 = smov 0   ;;  %s948_s17 = smov 0  }
   0xb   :  { %s950_s18 = smov 0   ;;  %s952_s19 = smov 0  }
   0xc   :  { %s954_s20 = smov 0   ;;  %s956_s21 = smov 0  }
   0xd   :  { %s958_s22 = smov 0  }
   0xe LB: > { %1310 = sst [smem:[#allocation12_spill]] %s876_s14  ;;  %s992_s23 = sadd.s32 4294967295, %s908_s22   ;;  %s908_s22 = sphi %s958_s22, %s22_s22   ;;  %s904_s21 = sphi %s956_s21, %s1343_s21   ;;  %s900_s20 = sphi %s954_s20, %s1342_s20   ;;  %s896_s19 = sphi %s952_s19, %s1341_s19   ;;  %s892_s18 = sphi %s950_s18, %s1340_s18   ;;  %s888_s17 = sphi %s948_s17, %s1339_s17   ;;  %s884_s16 = sphi %s946_s16, %s1347_s16   ;;  %s880_s15 = sphi %s944_s15, %s1346_s15   ;;  %s876_s14 = sphi %s942_s14, %s1337_s14   ;;  %s872_s13 = sphi %s940_s13, %s1345_s13   ;;  %s868_s12 = sphi %s938_s12, %s1344_s12  }
   0xf   : > { %1311 = sst [smem:[#allocation13_spill]] %s888_s17  ;;  %s547_s24 = sadd.s32 4294967294, %s908_s22  }
  0x10   : > { %1312 = sst [smem:[#allocation14_spill]] %s900_s20  ;;  %s31_s25 = sadd.s32 1, %s900_s20 }
  0x11   : > { %1313 = sst [smem:[#allocation15_spill]] %s904_s21  ;;  %s34_s26 = sadd.s32 1, %s904_s21 }
  0x12   : > { %p32_p0 = scmp.ge.s32.totalorder %s31_s25, 2  ;;  %s43_s27 = sadd.s32 1, %s888_s17 }
  0x13   : > { %p50_p1 = scmp.ne.s32.totalorder %s888_s17, %s884_s16  ;;  %p51_p2 = scmp.eq.s32.totalorder %s908_s22, 0 }
  0x14   : > { %s1349_s25 = smov (%p32_p0, %s31_s25), 0  ;;  %s1351_s26 = smov (!%p32_p0, %s34_s26), %s904_s21 }
  0x15   : > { %1314 = sst [smem:[#allocation16_spill]] %s1349_s25  ;;  %s39_s28 = ssub.s32 %s900_s20, %s1349_s25 }
  0x16   : > { %p1006_p3 = por %p51_p2, %p50_p1  ;;  %p36_p4 = scmp.ge.s32.totalorder %s1351_s26, 2 }
  0x17   : > { %p56_p5 = scmp.ne.s32.totalorder %s884_s16, %s880_s15  ;;  %p57_p6 = scmp.eq.s32.totalorder %s992_s23, 0 }
  0x18   : > { %s125_s30 = sadd.s32 1, %s876_s14  ;;  %s1353_s26 = smov (%p36_p4, %s1351_s26), 0 }
  0x19   : > { %1316 = sst [smem:[#allocation17_spill]] %s1353_s26  ;;  %p1015_p7 = por %p57_p6, %p56_p5 }
  0x1a   : > { %p135_p8 = scmp.ne.s32.totalorder %s876_s14, %s872_s13  ;;  %s38_s5 = ssub.s32 %s904_s21, %s1353_s26 }
  0x1b   : > { %s1317_s4 = scalar_select %p1015_p7, 1, 0 }
  0x1c   : > { %p136_p9 = scmp.eq.s32.totalorder %s992_s23, 3  ;;  %s40_s6 = sor.u32 %s39_s28, %s38_s5 }
  0x1d   : > { %p123_p10 = scmp.eq.s32.totalorder %s38_s5, 0  ;;  %p41_p11 = scmp.eq.s32.totalorder %s40_s6, 0 }
  0x1e   : > { %p1024_p12 = por %p136_p9, %p135_p8  ;;  %p141_p13 = scmp.ne.s32.totalorder %s872_s13, %s868_s12 }
  0x1f   : > { %s1029_s8 = scalar_select %p123_p10, %s876_s14, %s125_s30  }
  0x20   : > { %s1318_s7 = scalar_select %p1024_p12, 1, 0 }
  0x21   : > { %1319 = sst [smem:[#allocation18_spill]] %s1029_s8  ;;  %p142_p0 = scmp.eq.s32.totalorder %s547_s24, 3 }
  0x22   : > { %s1032_s9 = scalar_select %p41_p11, %s888_s17, %s43_s27  }
  0x23   : > { %p592_p1 = scmp.lt.s32.totalorder %s908_s22, 4  ;;  %p1037_p2 = por %p142_p0, %p141_p13 }
  0x24   : > { %1320 = sst [smem:[#allocation19_spill]] %s1032_s9  ;;  %s1295_s11 = sand.u32 1, %s888_s17  }
  0x25   : > { %s1321_s10 = scalar_select %p1037_p2, 1, 0 }
  0x26   : > { %s1044_s15 = sshll.u32 %s1295_s11, 5  ;;  %s551_s28 = sshll.u32 %s904_s21, 3 }
  0x27   : > { %s171_s5 = sadd.s32 %s900_s20, %s551_s28  ;;  %p1050_p4 = pnand %p592_p1, %p1006_p3 }
  0x28   : > { %s1054_s27 = sshll.u32 %s171_s5, 7  ;;  %s184_s24 = sand.u32 1, %s908_s22  }
  0x29   : > { %s1323_s1 = sld [smem:[#allocation21_spill]]  ;;  %s188_s28 = scalar_lea.vmem [#allocation5], %s1044_s15 }
  0x2a   : > { %s196_s29 = sshll.u32 %s188_s28, 4  ;;  %s1067_s11 = scalar_lea.sflag [#allocation6], %s184_s24  ;;  %s1064_s29 = int_to_ptr.vmem [resolvable:$true] %s196_s29 }
  0x2b   : > { %p1073_p6 = pneg %p1050_p4 }
  0x2f   : > { %s1061_s25 = scalar_lea.hbm %s1323_s1, %s1054_s27  ;;  %s697_s28 = scalar_lea.hbm %s1323_s1, 2048 }
  0x30   : > { %s692_s5 = scalar_lea.hbm %s1061_s25, 512  ;;  %p698_p10 = scmp.lt.u32.totalorder %s1061_s25, %s1323_s1 }
  0x31   : > { %p693_p5 = scmp.ne.s32.totalorder %s1061_s25, %s692_s5  ;;  %p699_p11 = scmp.lt.u32.totalorder %s697_s28, %s692_s5 }
  0x32   : > { %p701_p0 = scmp.lt.u32.totalorder %s692_s5, %s1061_s25 }
  0x33   : > { %p695_p8 = pnand %p1073_p6, %p693_p5  ;;  %p700_p13 = por %p699_p11, %p698_p10 }
  0x35   : > { %p696_p9 = pneg %p695_p8  ;;  %p702_p1 = por %p701_p0, %p700_p13 }
  0x37   : > { %p703_p3 = pnand %p702_p1, %p696_p9 }
  0x39   : > { %706 = shalt.err (!%p703_p3)
}
  0x3a   : > { %s707_s24 = scalar_lea.vmem %s1064_s29, 512  ;;  %s910_s26 = smov [#allocation5]  }
  0x3b   : > { %p708_p5 = scmp.ne.s32.totalorder %s1064_s29, %s707_s24  ;;  %s712_s6 = sshll.u32 %s910_s26, 4  ;;  %s713_s6 = int_to_ptr.vmem [resolvable:$false] %s712_s6 }
  0x3c   : > { %s714_s20 = scalar_lea.vmem %s713_s6, 1024  ;;  %p715_p12 = scmp.lt.s32.totalorder %s1064_s29, %s713_s6 }
  0x3d   : > { %p710_p8 = pnand %p708_p5, %p1073_p6  ;;  %p716_p7 = scmp.lt.s32.totalorder %s714_s20, %s707_s24 }
  0x3f   : > { %p711_p2 = pneg %p710_p8  ;;  %p717_p10 = por %p716_p7, %p715_p12 }
  0x41   : > { %p718_p11 = pnand %p717_p10, %p711_p2 }
  0x43   : > { %721 = shalt.err (!%p718_p11)
}
  0x44   : > { %s1300_s9 = smov 256   ;;  %s1302_s5 = smov 128  }
  0x45   : > { %s1304_s28 = smov 8   ;;  %p226_p7 = scmp.lt.s32.totalorder %s908_s22, 5 }
  0x46   : > { %584 = dma.hbm_to_vmem [thread:$0]  (!%p1050_p4), %s1061_s25, 512, %s1064_s29, %s1067_s11, %s1300_s9, %s1302_s5, %s1304_s28  }
  0x47   : > { %p1325_p12 = scmp.ge.s32.totalorder %s908_s22, 1  ;;  %s1327_s0 = sld [smem:[#allocation20_spill]] }
  0x48   : > { %s166_s1 = scalar_lea.vmem [#allocation2], %s1044_s15  ;;  %s1328_s25 = sand.u32 1, %s888_s17  }
  0x49   : > { %p1103_p2 = pnand %p1325_p12, %p226_p7  ;;  %s174_s8 = sshll.u32 %s166_s1, 4  ;;  %s1114_s8 = int_to_ptr.vmem [resolvable:$true] %s174_s8 }
  0x4a   : > { %s1118_s29 = scalar_lea.sflag [#allocation3], %s1328_s25 }
  0x4b   : > { %s1326_s24 = scalar_select %p1103_p2, 1, 0 }
  0x4d   : > { %s1111_s20 = scalar_lea.hbm %s1327_s0, %s1054_s27  ;;  %s727_s6 = scalar_lea.hbm %s1327_s0, 2048 }
  0x4e   : > { %s722_s9 = scalar_lea.hbm %s1111_s20, 512  ;;  %p728_p0 = scmp.lt.u32.totalorder %s1111_s20, %s1327_s0 }
  0x4f   : > { %p723_p3 = scmp.ne.s32.totalorder %s1111_s20, %s722_s9  ;;  %p729_p1 = scmp.lt.u32.totalorder %s727_s6, %s722_s9 }
  0x50   : > { %p731_p8 = scmp.lt.u32.totalorder %s722_s9, %s1111_s20 }
  0x51   : > { %p725_p9 = pnand %p723_p3, %p1073_p6  ;;  %p730_p5 = por %p729_p1, %p728_p0 }
  0x53   : > { %p726_p13 = pneg %p725_p9  ;;  %p732_p10 = por %p731_p8, %p730_p5 }
  0x55   : > { %p733_p11 = pnand %p732_p10, %p726_p13 }
  0x57   : > { %736 = shalt.err (!%p733_p11)
}
  0x58   : > { %s737_s1 = scalar_lea.vmem %s1114_s8, 512  ;;  %s914_s5 = smov [#allocation2]  }
  0x59   : > { %p738_p7 = scmp.ne.s32.totalorder %s1114_s8, %s737_s1  ;;  %s742_s25 = sshll.u32 %s914_s5, 4  ;;  %s743_s25 = int_to_ptr.vmem [resolvable:$false] %s742_s25 }
  0x5a   : > { %s744_s14 = scalar_lea.vmem %s743_s25, 1024  ;;  %p745_p9 = scmp.lt.s32.totalorder %s1114_s8, %s743_s25 }
  0x5b   : > { %p740_p12 = pnand %p738_p7, %p1073_p6  ;;  %p746_p2 = scmp.lt.s32.totalorder %s744_s14, %s737_s1 }
  0x5d   : > { %p741_p3 = pneg %p740_p12  ;;  %p747_p0 = por %p746_p2, %p745_p9 }
  0x5f   : > { %p748_p1 = pnand %p747_p0, %p741_p3 }
  0x61   : > { %751 = shalt.err (!%p748_p1)
}
  0x62   : > { %s1329_s9 = smov 8   ;;  %s1330_s28 = smov 128  }
  0x63   : > { %s1331_s26 = smov 256   ;;  %s1149_s25 = scalar_lea.hbm %s1291_s2, %s1054_s27 }
  0x64   : > { %581 = dma.hbm_to_vmem [thread:$0]  (!%p1050_p4), %s1111_s20, 512, %s1114_s8, %s1118_s29, %s1331_s26, %s1330_s28, %s1329_s9  }
  0x65   : > { %s210_s1 = scalar_lea.vmem [#allocation7], %s1044_s15  ;;  %s752_s0 = scalar_lea.hbm %s1149_s25, 512 }
  0x66   : > { %s218_s14 = sshll.u32 %s210_s1, 4  ;;  %p753_p2 = scmp.ne.s32.totalorder %s1149_s25, %s752_s0  ;;  %s1152_s14 = int_to_ptr.vmem [resolvable:$true] %s218_s14 }
  0x67   : > { %s757_s20 = scalar_lea.hbm %s1291_s2, 2048  ;;  %p758_p8 = scmp.lt.u32.totalorder %s1149_s25, %s1291_s2 }
  0x68   : > { %p755_p13 = pnand %p753_p2, %p1073_p6  ;;  %p759_p10 = scmp.lt.u32.totalorder %s757_s20, %s752_s0 }
  0x69   : > { %p761_p7 = scmp.lt.u32.totalorder %s752_s0, %s1149_s25 }
  0x6a   : > { %p756_p5 = pneg %p755_p13  ;;  %p760_p11 = por %p759_p10, %p758_p8 }
  0x6c   : > { %p762_p12 = por %p761_p7, %p760_p11 }
  0x6e   : > { %p763_p3 = pnand %p762_p12, %p756_p5 }
  0x70   : > { %766 = shalt.err (!%p763_p3)
}
  0x71   : > { %s767_s15 = scalar_lea.vmem %s1152_s14, 512  ;;  %s915_s17 = smov [#allocation7]  }
  0x72   : > { %p768_p9 = scmp.ne.s32.totalorder %s1152_s14, %s767_s15  ;;  %s772_s6 = sshll.u32 %s915_s17, 4  ;;  %s773_s6 = int_to_ptr.vmem [resolvable:$false] %s772_s6 }
  0x73   : > { %s774_s5 = scalar_lea.vmem %s773_s6, 1024  ;;  %p775_p2 = scmp.lt.s32.totalorder %s1152_s14, %s773_s6 }
  0x74   : > { %p770_p0 = pnand %p768_p9, %p1073_p6  ;;  %p776_p13 = scmp.lt.s32.totalorder %s774_s5, %s767_s15 }
  0x76   : > { %p771_p1 = pneg %p770_p0  ;;  %p777_p8 = por %p776_p13, %p775_p2 }
  0x78   : > { %p778_p10 = pnand %p777_p8, %p771_p1 }
  0x7a   : > { %781 = shalt.err (!%p778_p10)
}
  0x7b   : > { %587 = dma.hbm_to_vmem [thread:$0]  (!%p1050_p4), %s1149_s25, 512, %s1152_s14, %s1067_s11, %s1331_s26, %s1330_s28, %s1329_s9  }
  0x7c   : > { %p1332_p6 = scmp.ne.s32.totalorder %s1326_s24, 0 }
  0x7d   : > { %s232_s0 = sand.u32 (!%p1332_p6), 1, %s884_s16   ;;  %p1333_p5 = scmp.ne.s32.totalorder (!%p1332_p6), %s1317_s4, 0 }
  0x7e   : > { %230 = sbr.rel (%p1332_p6) target bundleno = 206 (0xce), region = 32  ;;  %s560_s21 = sshll.u32 (!%p1332_p6), %s232_s0, 5 }
  0x7f   : > { %s233_s1 = scalar_lea.sflag (!%p1332_p6), [#allocation3], %s232_s0  ;;  %s236_s8 = scalar_lea.vmem (!%p1332_p6), [#allocation2], %s560_s21 }
  0x85   : > { %855 = dma.done.wait (%p1333_p5), %s233_s1, 512  }
  0x86   : > { %857 = vsyncadd (%p1333_p5), %s233_s1, 4294966784  ;;  %s241_s30 = sand.u32 1, %s992_s23   ;;  %s245_s29 = scalar_lea.vmem [#allocation5], %s560_s21 }
  0x87   : > { %s242_s20 = scalar_lea.sflag [#allocation6], %s241_s30 }
  0x88   : > { %859 = dma.done.wait (%p1333_p5), %s242_s20, 1024  }
  0x89   : > { %861 = vsyncadd (%p1333_p5), %s242_s20, 4294966272  ;;  %s284_s11 = sand.u32 1, %s872_s13   ;;  %v297_v0 = vld [vmem:[%s236_s8] sm:$0xff]  ;;  %v298_v1 = vld [vmem:[%s236_s8 + $0x8] sm:$0xff]  ;;  %vm305_vm0 = vcmask 130048   ;;  %s254_s23 = scalar_lea.vmem [#allocation7], %s560_s21  ;;  %v287_v49 = vlaneseq }
  0x8a   : > { %s1194_s24 = sshll.u32 %s284_s11, 3  ;;  %v299_v2 = vld [vmem:[%s236_s8 + $0x10] sm:$0xff]  ;;  %v300_v3 = vld [vmem:[%s236_s8 + $0x18] sm:$0xff]  ;;  %v301_v4 = vmul.f32 %v297_v0, %v297_v0  ;;  %v302_v5 = vmul.f32 %v298_v1, %v298_v1  ;;  %v319_v6 = vld [vmem:[%s245_s29] sm:$0xff]  ;;  %s564_s4 = sshll.u32 %s892_s18, 3 }
  0x8b   : > { %v303_v7 = vmul.f32 %v299_v2, %v299_v2  ;;  %v304_v8 = vmul.f32 %v300_v3, %v300_v3  ;;  %v320_v9 = vld [vmem:[%s245_s29 + $0x8] sm:$0xff]  ;;  %v321_v10 = vld [vmem:[%s245_s29 + $0x10] sm:$0xff]  ;;  %v322_v11 = vld [vmem:[%s245_s29 + $0x18] sm:$0xff]  ;;  %v323_v12 = vmul.f32 %v319_v6, %v319_v6  ;;  %v288_v59 = vshrl.u32 %v287_v49, 7  ;;  %s286_s9 = scalar_lea.vmem [#allocation8], %s1194_s24  ;;  %p565_p4 = scmp.ne.s32.totalorder %s892_s18, 0 }
  0x8c   : > { %v306_v13 = vsel %vm305_vm0, %v301_v4, 0.0  ;;  %v307_v14 = vsel %vm305_vm0, %v302_v5, 0.0  ;;  %v324_v15 = vmul.f32 %v320_v9, %v320_v9  ;;  %v325_v16 = vmul.f32 %v321_v10, %v321_v10  ;;  %v356_v17 = vld [vmem:[%s254_s23] sm:$0xff]  ;;  %v357_v18 = vld [vmem:[%s254_s23 + $0x8] sm:$0xff]  ;;  %v358_v23 = vld [vmem:[%s254_s23 + $0x10] sm:$0xff] }
  0x8d   : > { %v308_v19 = vadd.f32 %v307_v14, %v306_v13  ;;  %v309_v20 = vsel %vm305_vm0, %v303_v7, 0.0  ;;  %v311_v21 = vsel %vm305_vm0, %v304_v8, 0.0  ;;  %v326_v22 = vmul.f32 %v322_v11, %v322_v11  ;;  %v359_v24 = vld [vmem:[%s254_s23 + $0x18] sm:$0xff] }
  0x8e   : > { %v327_v25 = vsel %vm305_vm0, %v323_v12, 0.0  ;;  %v328_v26 = vsel %vm305_vm0, %v324_v15, 0.0  ;;  %v330_v27 = vsel %vm305_vm0, %v325_v16, 0.0  ;;  %v360_v28 = vmul.f32 %v356_v17, %v356_v17 }
  0x8f   : > { %v310_v29 = vadd.f32 %v309_v20, %v308_v19  ;;  %v329_v30 = vadd.f32 %v328_v26, %v327_v25  ;;  %v361_v31 = vmul.f32 %v357_v18, %v357_v18  ;;  %v332_v32 = vsel %vm305_vm0, %v326_v22, 0.0 }
  0x90   : > { %v362_v33 = vmul.f32 %v358_v23, %v358_v23  ;;  %v363_v34 = vmul.f32 %v359_v24, %v359_v24  ;;  %v364_v35 = vsel %vm305_vm0, %v360_v28, 0.0 }
  0x91   : > { %v312_v36 = vadd.f32 %v311_v21, %v310_v29  ;;  %v331_v37 = vadd.f32 %v330_v27, %v329_v30  ;;  %v365_v38 = vsel %vm305_vm0, %v361_v31, 0.0  ;;  %v293_v21 = vand.u32 127, %v287_v49 }
  0x92   : > { %v366_v39 = vadd.f32 %v365_v38, %v364_v35  ;;  %v367_v40 = vsel %vm305_vm0, %v362_v33, 0.0  ;;  %v369_v43 = vsel %vm305_vm0, %v363_v34, 0.0 }
  0x93   : > { %v313_v41 = vmax.f32 %v312_v36, 1e-24  ;;  %v333_v42 = vadd.f32 %v332_v32, %v331_v37  ;;  %vm295_vm2 = vcmp.lt.s32.totalorder %v293_v21, 16  ;;  %v916_v36 = vmov (!%p565_p4), 0.0  }
  0x94   : > { %v368_v44 = vadd.f32 %v367_v40, %v366_v39  ;;  %398 = vst.msk [vmem:[%s286_s9] sm:$0xff] (!%p565_p4), %vm305_vm0, %v916_v36 }
  0x95   : > { %686 = vrsqrt.f32 %v313_v41  ;;  %v334_v45 = vmax.f32 %v333_v42, 1e-24 }
  0x96   : > { %v370_v46 = vadd.f32 %v369_v43, %v368_v44 }
  0x97   : > { %688 = vrsqrt.f32 %v334_v45 }
  0x98   : > { %v371_v47 = vmax.f32 %v370_v46, 1e-24 }
  0x9a   : > { %690 = vrsqrt.f32 %v371_v47 }
  0x9f   : > { %v687_v48 = vpop.eup %686 }
  0xa0   : > { %v315_v50 = vmul.f32 %v687_v48, %v297_v0  ;;  %v316_v51 = vmul.f32 %v687_v48, %v298_v1  ;;  %v317_v52 = vmul.f32 %v687_v48, %v299_v2  ;;  %v318_v53 = vmul.f32 %v687_v48, %v300_v3 }
  0xa1   : > { %v689_v54 = vpop.eup %688  ;;  %v290_v0 = vstv %s564_s4 }
  0xa2   : > { %v336_v55 = vmul.f32 %v689_v54, %v319_v6  ;;  %v337_v56 = vmul.f32 %v689_v54, %v320_v9  ;;  %v338_v57 = vmul.f32 %v689_v54, %v321_v10  ;;  %v339_v58 = vmul.f32 %v689_v54, %v322_v11 }
  0xa3   : > { %v291_v20 = vadd.s32 %v290_v0, %v288_v59 }
  0xa4   : > { %v691_v60 = vpop.eup %690  ;;  %v340_v61 = vsub.f32 %v336_v55, %v315_v50  ;;  %v341_v62 = vsub.f32 %v337_v56, %v316_v51  ;;  %v342_v63 = vsub.f32 %v338_v57, %v317_v52  ;;  %v343_v4 = vsub.f32 %v339_v58, %v318_v53 }
  0xa5   : > { %v373_v5 = vmul.f32 %v691_v60, %v356_v17  ;;  %v374_v7 = vmul.f32 %v691_v60, %v357_v18  ;;  %v375_v8 = vmul.f32 %v691_v60, %v358_v23  ;;  %v376_v12 = vmul.f32 %v691_v60, %v359_v24 }
  0xa6   : > { %v344_v1 = vand.u32 2147483647, %v340_v61  ;;  %v345_v2 = vand.u32 2147483647, %v341_v62  ;;  %v346_v3 = vand.u32 2147483647, %v342_v63 }
  0xa7   : > { %v347_v13 = vand.u32 2147483647, %v343_v4  ;;  %v377_v6 = vsub.f32 %v373_v5, %v336_v55  ;;  %v378_v9 = vsub.f32 %v374_v7, %v337_v56  ;;  %v379_v10 = vsub.f32 %v375_v8, %v338_v57 }
  0xa8   : > { %v348_v11 = vsel %vm305_vm0, %v344_v1, 0.0  ;;  %v349_v14 = vsel %vm305_vm0, %v345_v2, 0.0  ;;  %v351_v15 = vsel %vm305_vm0, %v346_v3, 0.0  ;;  %v380_v16 = vsub.f32 %v376_v12, %v339_v58 }
  0xa9   : > { %v350_v19 = vadd.f32 %v349_v14, %v348_v11  ;;  %v381_v17 = vand.u32 2147483647, %v377_v6  ;;  %v382_v18 = vand.u32 2147483647, %v378_v9  ;;  %v383_v22 = vand.u32 2147483647, %v379_v10 }
  0xaa   : > { %v384_v23 = vand.u32 2147483647, %v380_v16  ;;  %v353_v25 = vsel %vm305_vm0, %v347_v13, 0.0  ;;  %vm294_vm1 = vcmp.lt.s32.totalorder %v291_v20, 16 }
  0xab   : > { %v352_v24 = vadd.f32 %v351_v15, %v350_v19  ;;  %v385_v26 = vsel %vm305_vm0, %v381_v17, 0.0  ;;  %v386_v27 = vsel %vm305_vm0, %v382_v18, 0.0  ;;  %v388_v29 = vsel %vm305_vm0, %v383_v22, 0.0  ;;  %vm296_vm3 = vmand %vm294_vm1, %vm295_vm2 }
  0xac   : > { %v387_v28 = vadd.f32 %v386_v27, %v385_v26  ;;  %v390_v30 = vsel %vm305_vm0, %v384_v23, 0.0 }
  0xad   : > { %v354_v31 = vadd.f32 %v353_v25, %v352_v24 }
  0xae   : > { %v389_v32 = vadd.f32 %v388_v29, %v387_v28  ;;  %397 = sbr.rel (%p565_p4) target bundleno = 181 (0xb5), region = 48 }
  0xb0   : > { %v391_v33 = vadd.f32 %v390_v30, %v389_v32 }
  0xb2   : > { %v392_v34 = vadd.f32 %v391_v33, %v354_v31 }
  0xb4   : > { %v393_v35 = vsel %vm296_vm3, %v392_v34, 0.0 }
  0xb5 PF: > { %v399_v37 = vld [vmem:[%s286_s9] sm:$0xff]  ;;  %s567_s28 = sshll.u32 %s896_s19, 7  ;;  %s416_s27 = sshll.u32 %s286_s9, 4  ;;  %s1226_s27 = int_to_ptr.vmem [resolvable:$true] %s416_s27 }
  0xb6   : > { %v400_v38 = vadd.f32 %v399_v37, %v393_v35  ;;  %s1224_s14 = scalar_lea.hbm %s1292_s3, %s567_s28  ;;  %s403_s18 = scalar_lea.sflag [#allocation4], %s284_s11 }
  0xb7   : > { %s782_s15 = scalar_lea.vmem %s1226_s27, 128  ;;  %p1334_p7 = scmp.ne.s32.totalorder %s1318_s7, 0 }
  0xb8   : > { %401 = vst.msk [vmem:[%s286_s9] sm:$0xff] %vm305_vm0, %v400_v38  ;;  %p783_p11 = scmp.ne.s32.totalorder %s1226_s27, %s782_s15  ;;  %s917_s19 = smov [#allocation8]  }
  0xb9   : > { %s786_s17 = sshll.u32 %s917_s19, 4  ;;  %s787_s17 = int_to_ptr.vmem [resolvable:$false] %s786_s17 }
  0xba   : > { %p784_p12 = pnand %p783_p11, %p1334_p7  ;;  %s788_s6 = scalar_lea.vmem %s787_s17, 256 }
  0xbb   : > { %p789_p9 = scmp.lt.s32.totalorder %s1226_s27, %s787_s17  ;;  %p790_p0 = scmp.lt.s32.totalorder %s788_s6, %s782_s15 }
  0xbc   : > { %p785_p3 = pneg %p784_p12 }
  0xbd   : > { %p791_p1 = por %p790_p0, %p789_p9 }
  0xbf   : > { %p792_p2 = pnand %p791_p1, %p785_p3 }
  0xc1   : > { %795 = shalt.err (!%p792_p2)
}
  0xc2   : > { %s796_s5 = scalar_lea.hbm %s1224_s14, 128  ;;  %s800_s1 = scalar_lea.hbm %s1292_s3, 256 }
  0xc3   : > { %p797_p13 = scmp.ne.s32.totalorder %s1224_s14, %s796_s5  ;;  %p801_p6 = scmp.lt.u32.totalorder %s1224_s14, %s1292_s3 }
  0xc4   : > { %p802_p5 = scmp.lt.u32.totalorder %s800_s1, %s796_s5  ;;  %p804_p11 = scmp.lt.u32.totalorder %s796_s5, %s1224_s14 }
  0xc5   : > { %p798_p8 = pnand %p797_p13, %p1334_p7 }
  0xc6   : > { %p803_p4 = por %p802_p5, %p801_p6 }
  0xc7   : > { %p799_p10 = pneg %p798_p8 }
  0xc8   : > { %p805_p12 = por %p804_p11, %p803_p4 }
  0xca   : > { %p806_p3 = pnand %p805_p12, %p799_p10 }
  0xcc   : > { %809 = shalt.err (!%p806_p3)
}
  0xcd   : > { %576 = dma.vmem_to_hbm [thread:$0]  (%p1334_p7), %s1226_s27, 128, %s1224_s14, %s403_s18  }
  0xce PF: > { %p593_p9 = scmp.ge.s32.totalorder %s908_s22, 2  ;;  %s428_s20 = sand.u32 1, %s868_s12  }
  0xcf   : > { %p1335_p0 = scmp.ne.s32.totalorder %s1321_s10, 0  ;;  %s429_s29 = scalar_lea.sflag [#allocation4], %s428_s20 }
  0xd1   : > { %p589_p1 = pnand %p593_p9, %p1335_p0 }
  0xd3   : > { %863 = dma.done.wait (!%p589_p1), %s429_s29, 128  }
  0xd4   : > { %865 = vsyncadd (!%p589_p1), %s429_s29, 4294967168  ;;  %s22_s22 = sadd.s32 1, %s908_s22   ;;  %s1336_s11 = sld [smem:[#allocation12_spill]] }
  0xd5   : > { %p19_p2 = scmp.ge.s32.totalorder %s22_s22, 6   ;;  %s1337_s14 = sld [smem:[#allocation18_spill]] }
  0xd6   : > { %s1338_s7 = sld [smem:[#allocation13_spill]]  ;;  %s1339_s17 = sld [smem:[#allocation19_spill]] }
  0xd7   : > { %s1340_s18 = sld [smem:[#allocation14_spill]]  ;;  %s1341_s19 = sld [smem:[#allocation15_spill]] }
  0xd8   : > { %s1342_s20 = sld [smem:[#allocation16_spill]]  ;;  %s1343_s21 = sld [smem:[#allocation17_spill]] }
  0xd9   : > { %s1344_s12 = smov %s872_s13  ;;  %s1346_s15 = smov %s884_s16 }
  0xda   : > { %s1345_s13 = smov %s1336_s11  ;;  %21 = sbr.rel (!%p19_p2) target bundleno = 14 (0xe), region = 105 }
  0xdc   : > { %s1347_s16 = smov %s1338_s7 }
  0xe1   :  { %434 = vsyncpa [#allocation3], 1 }
  0xe2   :  { %436 = vsyncpa [#allocation3 + $0x1], 1 }
  0xe3   :  { %437 = vsyncpa [#allocation6], 1 }
  0xe4   :  { %439 = vsyncpa [#allocation6 + $0x1], 1 }
  0xe5   :  { %440 = vsyncpa [#allocation4], 1 }
  0xe6   :  { %442 = vsyncpa [#allocation4 + $0x1], 1 }

</bundles_post_ra>
